<compile_context>
chip_gen: v7x
topology: tpu7x:2x2x1
jax: 0.10.0
libtpu: 0.0.40
codegen_flags: <defaults>
</compile_context>

<pallas_src>
import functools

import jax
import jax.numpy as jnp
from jax.experimental import pallas as pl
from jax.experimental.pallas import tpu as pltpu


_HALO_MIN = 6   # three chained 5x5 / stride-1 pools -> radius 2 each
_HALO_BLK = 8   # halo rows actually read per side (8-row blocks stay block-aligned)


# -----------------------------------------------------------------------------
# VMEM budgeting helpers (re-derived per generation: v7x 64 MiB, v5e/v6e 128 MiB)
# -----------------------------------------------------------------------------
def _vmem_capacity_bytes():
    try:
        return int(pltpu.get_tpu_info().vmem_capacity_bytes)
    except Exception:
        return 64 * 1024 * 1024  # conservative fallback (v7x per-core VMEM)


def _pass1_step_bytes(tile_rows, w, c1, c_, act_bytes):
    ts = tile_rows * w
    io = 2 * (4 * ts * c1 + act_bytes * ts * c_ + 4 * c_)   # double-buffered blocks
    wts = 2 * (act_bytes * c1 * c_ + 4 * c_)
    work = 4 * ts * (c1 + 2 * c_)                           # x2d copy + f32 matmul out
    return io + wts + work


def _pass2_step_bytes(tile_rows, w, c_, c2, halo, act_bytes):
    ts = tile_rows * w
    ext = (tile_rows + 2 * halo) * w
    io = 2 * (act_bytes * (ts + 2 * halo * w) * c_ + 4 * ts * c2 + 4 * c2)
    wts = 2 * 4 * act_bytes * c_ * c2                       # four branch weights
    # buf + the materialized sublane-shift temporaries inside _maxpool5 (several
    # tile-sized copies live at the peak) + f32 accumulator / output staging.
    work = 6 * act_bytes * ext * c_ + 3 * 4 * ts * c2
    return io + wts + work


def _vmem_limit_bytes(step_bytes):
    cap = _vmem_capacity_bytes()
    lim = max(step_bytes + step_bytes // 2, 32 * 1024 * 1024)
    return int(min(lim, (7 * cap) // 10))    # ~44 MiB cap on v7x, ~89 MiB on v5e/v6e


def _choose_tile_rows(h, w, c_, c2, act_bytes):
    """Largest row tile dividing H (multiple of 8 if tiled) fitting ~1/3 of VMEM."""
    budget = _vmem_capacity_bytes() // 3
    cands = [th for th in range(h, 0, -1)
             if h % th == 0 and (th == h or th % _HALO_BLK == 0)]
    for th in cands:
        halo = 0 if th == h else _HALO_BLK
        if _pass2_step_bytes(th, w, c_, c2, halo, act_bytes) <= budget:
            return th
    return cands[-1]   # best effort: smallest legal tile


# -----------------------------------------------------------------------------
# Pass 1: cv1 (1x1 conv + folded BN + ReLU) + per-(batch, tile) partial sums
# -----------------------------------------------------------------------------
def _cv1_sum_kernel(x_ref, w1_ref, b1_ref, h1_ref, psum_ref, *, mxu_dtype):
    th, w, c1 = x_ref.shape
    x2d = x_ref[...].reshape(th * w, c1).astype(mxu_dtype)
    h = jnp.dot(x2d, w1_ref[...], preferred_element_type=jnp.float32)
    h = jnp.maximum(h + b1_ref[...], 0.0)                     # (th*w, c_) f32
    h1_ref[...] = h.reshape(th, w, -1).astype(h1_ref.dtype)   # bf16 store at prod sizes
    # Per-tile partial spatial sum for the global average pool; reduced over the
    # tile axis in O(B*nt*C_) glue so both grid axes stay "parallel" (megacore).
    psum_ref[...] = jnp.sum(h, axis=0, keepdims=True)


# -----------------------------------------------------------------------------
# Separable 5x5 / stride-1 / pad-2 max pool (zero padding; valid since inputs >= 0)
# -----------------------------------------------------------------------------
def _maxpool5(a):
    hb, w, c = a.shape
    # Horizontal (W / sublane) pass: zero-padded buffer + 4 shifted maxes.
    pw = jnp.zeros((hb, w + 4, c), a.dtype)
    pw = jax.lax.dynamic_update_slice(pw, a, (0, 2, 0))
    m = pw[:, 0:w, :]
    for k in range(1, 5):
        m = jnp.maximum(m, pw[:, k:k + w, :])
    # Vertical pass along the leading (untiled) axis: shifts are cheap.
    ph = jnp.zeros((hb + 4, w, c), a.dtype)
    ph = jax.lax.dynamic_update_slice(ph, m, (2, 0, 0))
    out = ph[0:hb, :, :]
    for k in range(1, 5):
        out = jnp.maximum(out, ph[k:k + hb, :, :])
    return out


# -----------------------------------------------------------------------------
# Pass 2: chained max pools + cv2 (1x1 conv + folded BN + ReLU), row tile + halo
# -----------------------------------------------------------------------------
def _pool_cv2_kernel(*refs, halo):
    if halo:
        (cur_ref, top_ref, bot_ref, w2x_ref, w2y1_ref, w2y2_ref, w2y3_ref,
         bias_ref, o_ref) = refs
    else:
        (cur_ref, w2x_ref, w2y1_ref, w2y2_ref, w2y3_ref, bias_ref, o_ref) = refs

    th, w, c_ = cur_ref.shape
    c2 = o_ref.shape[-1]
    cur = cur_ref[...]

    if halo:
        t = pl.program_id(1)
        nt = pl.num_programs(1)
        # 8-row halo slabs from the neighbouring rows of h1; at image borders the
        # slab is zeroed, which equals MaxPool2d padding for non-negative inputs.
        keep_prev = (t > 0).astype(cur.dtype)
        keep_next = (t < nt - 1).astype(cur.dtype)
        top = top_ref[...] * keep_prev
        bot = bot_ref[...] * keep_next
        buf = jnp.concatenate([top, cur, bot], axis=0)   # (th + 16, w, c_)
    else:
        buf = cur

    def center2d(a):   # rows belonging to this tile, flattened for the MXU
        return a[halo:halo + th].reshape(th * w, c_)

    def branch(a2d, w_ref):   # activations and weights are already in MXU dtype
        return jnp.dot(a2d, w_ref[...], preferred_element_type=jnp.float32)

    # cv2 decomposed per concat branch, interleaved with the pool chain so each
    # pooled tensor's live range ends as soon as it has been consumed.  The
    # avg-pool branch + cv2's BN bias arrive pre-folded in bias_ref (per batch).
    acc = branch(cur.reshape(th * w, c_), w2x_ref)
    y = _maxpool5(buf)
    acc += branch(center2d(y), w2y1_ref)
    y = _maxpool5(y)
    acc += branch(center2d(y), w2y2_ref)
    y = _maxpool5(y)
    acc += branch(center2d(y), w2y3_ref)

    out = jnp.maximum(acc + bias_ref[...], 0.0)        # (th*w, c2) f32
    o_ref[...] = out.reshape(th, w, c2).astype(o_ref.dtype)


# -----------------------------------------------------------------------------
# Wrapper
# -----------------------------------------------------------------------------
def fsppf_forward(x_nhwc, params, tile_rows=None):
    """FSPPF forward.  x_nhwc: (B, H, W, C1) float32 (NHWC); returns (B, H, W, C2)."""
    w1, b1, wa, ba, w2, b2 = params
    B, H, W, C1 = x_nhwc.shape
    C_ = w1.shape[1]
    C2 = w2.shape[1]

    # bf16 on the MXU (f32 accumulate) + bf16 h1 storage once channel counts are
    # realistic; tiny configs stay f32 so the small self-test is (near-)exact.
    mxu_dtype = jnp.bfloat16 if min(C1, C_, C2) >= 128 else jnp.float32
    act_bytes = 2 if mxu_dtype == jnp.bfloat16 else 4

    if tile_rows is None:
        tile_rows = _choose_tile_rows(H, W, C_, C2, act_bytes)
    if H % tile_rows != 0:
        raise ValueError(f"tile_rows={tile_rows} must divide H={H}")
    nt = H // tile_rows
    if nt > 1 and tile_rows % _HALO_BLK != 0:
        raise ValueError("tile_rows must be a multiple of 8 when using >1 row tile")
    halo = 0 if nt == 1 else _HALO_BLK

    # Weights pre-cast ONCE in the wrapper (halves weight DMA/VMEM, removes
    # per-grid-step cast passes).  Bias folds stay f32.
    w1m = w1.astype(mxu_dtype)
    w2x = w2[:C_].astype(mxu_dtype)
    w2a = w2[C_:3 * C_]                     # consumed only in the host-side fold
    w2y1 = w2[3 * C_:4 * C_].astype(mxu_dtype)
    w2y2 = w2[4 * C_:5 * C_].astype(mxu_dtype)
    w2y3 = w2[5 * C_:].astype(mxu_dtype)

    # ---- pass 1: cv1 (+ReLU) and per-(batch, tile) partial spatial sums ------
    pass1 = pl.pallas_call(
        functools.partial(_cv1_sum_kernel, mxu_dtype=mxu_dtype),
        out_shape=(jax.ShapeDtypeStruct((B, H, W, C_), mxu_dtype),
                   jax.ShapeDtypeStruct((B, nt, 1, C_), jnp.float32)),
        grid_spec=pltpu.PrefetchScalarGridSpec(
            num_scalar_prefetch=0,
            grid=(B, nt),
            in_specs=[
                pl.BlockSpec((None, tile_rows, W, C1), lambda b, t: (b, t, 0, 0)),
                pl.BlockSpec((C1, C_), lambda b, t: (0, 0)),
                pl.BlockSpec((1, C_), lambda b, t: (0, 0)),
            ],
            out_specs=[
                pl.BlockSpec((None, tile_rows, W, C_), lambda b, t: (b, t, 0, 0)),
                pl.BlockSpec((None, None, 1, C_), lambda b, t: (b, t, 0, 0)),
            ]),
        compiler_params=pltpu.CompilerParams(
            dimension_semantics=("parallel", "parallel"),
            vmem_limit_bytes=_vmem_limit_bytes(
                _pass1_step_bytes(tile_rows, W, C1, C_, act_bytes))),
    )
    h1, psums = pass1(x_nhwc, w1m, b1.reshape(1, C_).astype(jnp.float32))

    # ---- tiny per-batch glue (O(B*C) work) -----------------------------------
    # AdaptiveAvgPool2d(1) -> 1x1 conv (with bias) -> bilinear upsample of a 1x1
    # map (align_corners irrelevant for a 1x1 source) is a per-batch constant;
    # its cv2 contribution plus cv2's folded BN bias become one bias row.
    avg = jnp.sum(psums[:, :, 0, :], axis=1) / float(H * W)          # (B, C_)
    xa = avg @ wa + ba                                               # (B, 2*C_)
    bias2 = (xa @ w2a + b2)[:, None, :].astype(jnp.float32)          # (B, 1, C2)

    # ---- pass 2: chained max pools + cv2, row-tiled with 8-row halo slabs ----
    in_specs = [pl.BlockSpec((None, tile_rows, W, C_), lambda b, t: (b, t, 0, 0))]
    inputs = [h1]
    if halo:
        tpb = tile_rows // _HALO_BLK        # 8-row blocks per tile
        hblk = H // _HALO_BLK               # total 8-row blocks in H
        in_specs += [
            pl.BlockSpec((None, _HALO_BLK, W, C_),
                         lambda b, t: (b, jnp.maximum(t * tpb - 1, 0), 0, 0)),
            pl.BlockSpec((None, _HALO_BLK, W, C_),
                         lambda b, t: (b, jnp.minimum((t + 1) * tpb, hblk - 1), 0, 0)),
        ]
        inputs += [h1, h1]
    in_specs += [
        pl.BlockSpec((C_, C2), lambda b, t: (0, 0)),
        pl.BlockSpec((C_, C2), lambda b, t: (0, 0)),
        pl.BlockSpec((C_, C2), lambda b, t: (0, 0)),
        pl.BlockSpec((C_, C2), lambda b, t: (0, 0)),
        pl.BlockSpec((None, 1, C2), lambda b, t: (b, 0, 0)),
    ]
    inputs += [w2x, w2y1, w2y2, w2y3, bias2]

    pass2 = pl.pallas_call(
        functools.partial(_pool_cv2_kernel, halo=halo),
        out_shape=jax.ShapeDtypeStruct((B, H, W, C2), jnp.float32),
        grid_spec=pltpu.PrefetchScalarGridSpec(
            num_scalar_prefetch=0,
            grid=(B, nt),
            in_specs=in_specs,
            out_specs=pl.BlockSpec((None, tile_rows, W, C2),
                                   lambda b, t: (b, t, 0, 0))),
        compiler_params=pltpu.CompilerParams(
            dimension_semantics=("parallel", "parallel"),
            vmem_limit_bytes=_vmem_limit_bytes(
                _pass2_step_bytes(tile_rows, W, C_, C2, halo, act_bytes))),
    )
    return pass2(*inputs)


def fsppf_forward_nchw(x_nchw, params, tile_rows=None):
    """Strict NCHW convenience shim; each transpose costs an HBM round trip, so
    prefer keeping activations NHWC end-to-end and calling fsppf_forward."""
    out = fsppf_forward(jnp.transpose(x_nchw, (0, 2, 3, 1)), params, tile_rows)
    return jnp.transpose(out, (0, 3, 1, 2))


# -----------------------------------------------------------------------------
# Parameters (eval-mode BatchNorm folded into the 1x1 convs) and a JAX reference
# -----------------------------------------------------------------------------
def init_params(key, c1, c2):
    c_ = c1 // 2
    eps = 1e-5
    k = jax.random.split(key, 12)

    # cv1: Conv2d(c1, c_, 1, bias=False) + BN(c_)   (folded)
    w1_conv = 0.1 * jax.random.normal(k[0], (c1, c_), jnp.float32)
    g1 = 1.0 + 0.1 * jax.random.normal(k[1], (c_,), jnp.float32)
    beta1 = 0.1 * jax.random.normal(k[2], (c_,), jnp.float32)
    mean1 = 0.1 * jax.random.normal(k[3], (c_,), jnp.float32)
    var1 = 1.0 + 0.1 * jnp.abs(jax.random.normal(k[4], (c_,), jnp.float32))
    s1 = g1 / jnp.sqrt(var1 + eps)
    w1 = w1_conv * s1[None, :]
    b1 = beta1 - mean1 * s1

    # self.conv: Conv2d(c_, 2*c_, 1) with bias, no BN/act
    wa = 0.1 * jax.random.normal(k[5], (c_, 2 * c_), jnp.float32)
    ba = 0.1 * jax.random.normal(k[6], (2 * c_,), jnp.float32)

    # cv2: Conv2d(6*c_, c2, 1, bias=False) + BN(c2)   (folded)
    w2_conv = 0.1 * jax.random.normal(k[7], (6 * c_, c2), jnp.float32)
    g2 = 1.0 + 0.1 * jax.random.normal(k[8], (c2,), jnp.float32)
    beta2 = 0.1 * jax.random.normal(k[9], (c2,), jnp.float32)
    mean2 = 0.1 * jax.random.normal(k[10], (c2,), jnp.float32)
    var2 = 1.0 + 0.1 * jnp.abs(jax.random.normal(k[11], (c2,), jnp.float32))
    s2 = g2 / jnp.sqrt(var2 + eps)
    w2 = w2_conv * s2[None, :]
    b2 = beta2 - mean2 * s2

    return (w1, b1, wa, ba, w2, b2)


def reference_forward(x_nhwc, params):
    """Plain-JAX reference mirroring the PyTorch module (NHWC, folded eval-mode BN)."""
    w1, b1, wa, ba, w2, b2 = params
    B, H, W, _ = x_nhwc.shape
    C_ = w1.shape[1]
    h1 = jnp.maximum(jnp.einsum("bhwc,cd->bhwd", x_nhwc, w1) + b1, 0.0)
    avg = jnp.mean(h1, axis=(1, 2))
    xa = avg @ wa + ba
    xa_b = jnp.broadcast_to(xa[:, None, None, :], (B, H, W, 2 * C_))

    def mp(a):
        return jax.lax.reduce_window(
            a, -jnp.inf, jax.lax.max,
            (1, 5, 5, 1), (1, 1, 1, 1),
            ((0, 0), (2, 2), (2, 2), (0, 0)))

    y1 = mp(h1)
    y2 = mp(y1)
    y3 = mp(y2)
    cat = jnp.concatenate([h1, xa_b, y1, y2, y3], axis=-1)
    out = jnp.maximum(jnp.einsum("bhwc,cd->bhwd", cat, w2) + b2, 0.0)
    return out


if __name__ == "__main__":
    key = jax.random.PRNGKey(0)
    kx, kp, kx2, kp2 = jax.random.split(key, 4)

    # ---- small f32 config: exact check of the halo and single-tile paths -----
    B, C1, H, W, C2 = 2, 4, 16, 16, 8
    x = jax.random.normal(kx, (B, H, W, C1), jnp.float32)
    params = init_params(kp, C1, C2)
    ref = jax.block_until_ready(reference_forward(x, params))

    out = jax.block_until_ready(fsppf_forward(x, params, tile_rows=8))   # 2 tiles + halo
    assert out.shape == (B, H, W, C2), out.shape
    assert jnp.allclose(out, ref, rtol=1e-5, atol=1e-5), \
        float(jnp.max(jnp.abs(out - ref)))

    out2 = jax.block_until_ready(fsppf_forward(x, params))               # auto: single tile
    assert jnp.allclose(out2, ref, rtol=1e-5, atol=1e-5), \
        float(jnp.max(jnp.abs(out2 - ref)))

    # ---- production-like channel counts: bf16 h1/weights + multi-tile halo ---
    B3, C1_3, C2_3 = 2, 256, 256
    x3 = jax.random.normal(kx2, (B3, H, W, C1_3), jnp.float32)
    params3 = init_params(kp2, C1_3, C2_3)
    ref3 = jax.block_until_ready(reference_forward(x3, params3))
    out3 = jax.block_until_ready(fsppf_forward(x3, params3, tile_rows=8))
    assert out3.shape == ref3.shape, out3.shape
    max_err = float(jnp.max(jnp.abs(out3 - ref3)))
    rel_err = float(jnp.linalg.norm(out3 - ref3) / (jnp.linalg.norm(ref3) + 1e-6))
    assert max_err < 0.8 and rel_err < 3e-2, (max_err, rel_err)

    print("KERNEL_OK")
</pallas_src>

<mosaic_0001>
module attributes {stable_mosaic.version = 11 : i64} {
  func.func @_cv1_sum_kernel(%arg0: i32, %arg1: i32, %arg2: memref<1x8x16x4xf32, #tpu.memory_space<vmem>>, %arg3: memref<4x2xf32, #tpu.memory_space<vmem>>, %arg4: memref<1x2xf32, #tpu.memory_space<vmem>>, %arg5: memref<1x8x16x2xf32, #tpu.memory_space<vmem>>, %arg6: memref<1x1x1x2xf32, #tpu.memory_space<vmem>>) attributes {dimension_semantics = [#tpu.dimension_semantics<parallel>, #tpu.dimension_semantics<parallel>], iteration_bounds = array<i64: 2, 2>, scalar_prefetch = 0 : i64, scratch_operands = 0 : i64, tpu.core_type = #tpu.core_type<tc>, window_params = [{transform_indices = @transform_0, window_bounds = array<i64: 1, 8, 16, 4>}, {pipeline_mode = #tpu.pipeline_mode<synchronous>, transform_indices = @transform_1, window_bounds = array<i64: 4, 2>}, {pipeline_mode = #tpu.pipeline_mode<synchronous>, transform_indices = @transform_2, window_bounds = array<i64: 1, 2>}, {transform_indices = @transform_3, window_bounds = array<i64: 1, 8, 16, 2>}, {transform_indices = @transform_4, window_bounds = array<i64: 1, 1, 1, 2>}]} {
    %c0 = arith.constant 0 : index
    %c0_0 = arith.constant 0 : index
    %c0_1 = arith.constant 0 : index
    %c0_2 = arith.constant 0 : index
    %0 = vector.load %arg2[%c0, %c0_0, %c0_1, %c0_2] : memref<1x8x16x4xf32, #tpu.memory_space<vmem>>, vector<1x8x16x4xf32>
    %1 = vector.shape_cast %0 : vector<1x8x16x4xf32> to vector<8x16x4xf32>
    %2 = vector.shape_cast %1 : vector<8x16x4xf32> to vector<128x4xf32>
    %c0_3 = arith.constant 0 : index
    %c0_4 = arith.constant 0 : index
    %3 = vector.load %arg3[%c0_3, %c0_4] : memref<4x2xf32, #tpu.memory_space<vmem>>, vector<4x2xf32>
    %cst = arith.constant dense<0.000000e+00> : vector<128x2xf32>
    %4 = tpu.matmul %2, %3, %cst {dimension_numbers = #tpu.dot_dimension_numbers<[1], [0], [0], [1], [0, 0, 1, 1], [], []>} : vector<128x4xf32>, vector<4x2xf32>, vector<128x2xf32> -> vector<128x2xf32>
    %c0_5 = arith.constant 0 : index
    %c0_6 = arith.constant 0 : index
    %5 = vector.load %arg4[%c0_5, %c0_6] : memref<1x2xf32, #tpu.memory_space<vmem>>, vector<1x2xf32>
    %6 = vector.broadcast %5 : vector<1x2xf32> to vector<128x2xf32>
    %7 = arith.addf %4, %6 : vector<128x2xf32>
    %cst_7 = arith.constant 0.000000e+00 : f32
    %8 = vector.broadcast %cst_7 : f32 to vector<128x2xf32>
    %9 = arith.maximumf %7, %8 : vector<128x2xf32>
    %10 = vector.shape_cast %9 : vector<128x2xf32> to vector<8x16x2xf32>
    %c0_8 = arith.constant 0 : index
    %c0_9 = arith.constant 0 : index
    %c0_10 = arith.constant 0 : index
    %c0_11 = arith.constant 0 : index
    %11 = vector.load %arg5[%c0_8, %c0_9, %c0_10, %c0_11] : memref<1x8x16x2xf32, #tpu.memory_space<vmem>>, vector<1x8x16x2xf32>
    %12 = vector.shape_cast %11 : vector<1x8x16x2xf32> to vector<8x16x2xf32>
    %13 = vector.shape_cast %10 : vector<8x16x2xf32> to vector<1x8x16x2xf32>
    tpu.vector_store %arg5[%c0_8, %c0_9, %c0_10, %c0_11], %13 {strides = array<i32>} : memref<1x8x16x2xf32, #tpu.memory_space<vmem>>, vector<1x8x16x2xf32>,
    %cst_12 = arith.constant dense<0.000000e+00> : vector<2xf32>
    %14 = vector.multi_reduction <add>, %9, %cst_12 [0] : vector<128x2xf32> to vector<2xf32>
    %15 = vector.shape_cast %14 : vector<2xf32> to vector<1x2xf32>
    %c0_13 = arith.constant 0 : index
    %c0_14 = arith.constant 0 : index
    %c0_15 = arith.constant 0 : index
    %c0_16 = arith.constant 0 : index
    %16 = vector.load %arg6[%c0_13, %c0_14, %c0_15, %c0_16] : memref<1x1x1x2xf32, #tpu.memory_space<vmem>>, vector<1x1x1x2xf32>
    %17 = vector.shape_cast %16 : vector<1x1x1x2xf32> to vector<1x2xf32>
    %18 = vector.shape_cast %15 : vector<1x2xf32> to vector<1x1x1x2xf32>
    tpu.vector_store %arg6[%c0_13, %c0_14, %c0_15, %c0_16], %18 {strides = array<i32>} : memref<1x1x1x2xf32, #tpu.memory_space<vmem>>, vector<1x1x1x2xf32>,
    return
  }
  func.func @transform_0(%arg0: i32, %arg1: i32) -> (i32, i32, i32, i32) {
    %c0_i32 = arith.constant 0 : i32
    %c0_i32_0 = arith.constant 0 : i32
    %c0_i32_1 = arith.constant 0 : i32
    return %arg0, %arg1, %c0_i32, %c0_i32_0 : i32, i32, i32, i32
  }
  func.func @transform_1(%arg0: i32, %arg1: i32) -> (i32, i32) {
    %c0_i32 = arith.constant 0 : i32
    %c0_i32_0 = arith.constant 0 : i32
    %c0_i32_1 = arith.constant 0 : i32
    return %c0_i32, %c0_i32_0 : i32, i32
  }
  func.func @transform_2(%arg0: i32, %arg1: i32) -> (i32, i32) {
    %c0_i32 = arith.constant 0 : i32
    %c0_i32_0 = arith.constant 0 : i32
    %c0_i32_1 = arith.constant 0 : i32
    return %c0_i32, %c0_i32_0 : i32, i32
  }
  func.func @transform_3(%arg0: i32, %arg1: i32) -> (i32, i32, i32, i32) {
    %c0_i32 = arith.constant 0 : i32
    %c0_i32_0 = arith.constant 0 : i32
    %c0_i32_1 = arith.constant 0 : i32
    return %arg0, %arg1, %c0_i32, %c0_i32_0 : i32, i32, i32, i32
  }
  func.func @transform_4(%arg0: i32, %arg1: i32) -> (i32, i32, i32, i32) {
    %c0_i32 = arith.constant 0 : i32
    %c0_i32_0 = arith.constant 0 : i32
    %c0_i32_1 = arith.constant 0 : i32
    return %arg0, %arg1, %c0_i32, %c0_i32_0 : i32, i32, i32, i32
  }
}

</mosaic_0001>

<bundles_post_ra>
// kernel: tpu_custom_call.1
= control target key start
LH: loop header
LB: loop body
LE: loop exit
PB: predicated region body
PF: predicated region fallthrough
CT: control target
= control target key end

     0   :  { %10 = vsyncpa [#allocation3], 0  ;;  %s1215_s0 = inlined_call_operand.vmem [shape: f32[2,16,16,4], index: 0, kind: input, shape index: {}]   ;;  %s1216_s1 = inlined_call_operand.vmem [shape: f32[4,2], index: 1, kind: input, shape index: {}]   ;;  %s1217_s2 = inlined_call_operand.vmem [shape: f32[1,2], index: 2, kind: input, shape index: {}]   ;;  %s1218_s3 = inlined_call_operand.vmem [shape: f32[2,16,16,2], index: 3, kind: output, shape index: {0}]   ;;  %s1219_s4 = inlined_call_operand.hbm [shape: f32[2,2,1,2], index: 4, kind: output, shape index: {1}]  }
   0x1   :  { %12 = vsyncpa [#allocation3 + $0x1], 0  ;;  %s969_s15 = smov 0   ;;  %s971_s16 = smov 0  }
   0x2   :  { %s973_s17 = smov 0   ;;  %s975_s18 = smov 0  }
   0x3   :  { %s977_s19 = smov 0   ;;  %s979_s20 = smov 0  }
   0x4   :  { %s981_s21 = smov 0   ;;  %s983_s22 = smov 0  }
   0x5 LB: > { %s696_s23 = sadd.s32 4294967295, %s941_s22   ;;  %s697_s24 = sadd.s32 4294967294, %s941_s22   ;;  %s941_s22 = sphi %s983_s22, %s18_s22   ;;  %s937_s21 = sphi %s981_s21, %s1228_s21   ;;  %s933_s20 = sphi %s979_s20, %s1227_s20   ;;  %s929_s19 = sphi %s977_s19, %s1226_s19   ;;  %s925_s18 = sphi %s975_s18, %s1225_s18   ;;  %s921_s17 = sphi %s973_s17, %s1224_s17   ;;  %s917_s16 = sphi %s971_s16, %s1223_s16   ;;  %s913_s15 = sphi %s969_s15, %s1222_s15  }
   0x6   : > { %s27_s25 = sadd.s32 1, %s933_s20  ;;  %s30_s26 = sadd.s32 1, %s937_s21 }
   0x7   : > { %p28_p0 = scmp.ge.s32.totalorder %s27_s25, 2  ;;  %p147_p1 = scmp.ne.s32.totalorder %s921_s17, %s917_s16 }
   0x8   : > { %p148_p2 = scmp.eq.s32.totalorder %s696_s23, 3  ;;  %p153_p5 = scmp.ne.s32.totalorder %s917_s16, %s913_s15 }
   0x9   : > { %s1230_s25 = smov (%p28_p0, %s27_s25), 0  ;;  %s1232_s26 = smov (!%p28_p0, %s30_s26), %s937_s21 }
   0xa   : > { %s133_s27 = ssub.s32 %s933_s20, %s1230_s25  ;;  %p1020_p3 = por %p148_p2, %p147_p1 }
   0xb   : > { %p32_p4 = scmp.ge.s32.totalorder %s1232_s26, 2  ;;  %p154_p6 = scmp.eq.s32.totalorder %s697_s24, 3 }
   0xc   : > { %p700_p7 = scmp.ge.s32.totalorder %s941_s22, 1  ;;  %p192_p9 = scmp.lt.s32.totalorder %s941_s22, 5 }
   0xd   : > { %s1234_s26 = smov (%p32_p4, %s1232_s26), 0  ;;  %p1029_p8 = por %p154_p6, %p153_p5 }
   0xe   : > { %s132_s30 = ssub.s32 %s937_s21, %s1234_s26  ;;  %s137_s5 = sadd.s32 1, %s921_s17 }
   0xf   : > { %s134_s6 = sor.u32 %s133_s27, %s132_s30  ;;  %p193_p10 = pnand %p700_p7, %p192_p9 }
  0x10   : > { %p135_p11 = scmp.eq.s32.totalorder %s134_s6, 0  ;;  %v270_v0 = vld [vmem:[%s1216_s1] sm:$0xf] (!%p193_p10)  ;;  %vm327_vm0 = vcmask (!%p193_p10), 1043456   ;;  %s701_s10 = sshll.u32 (!%p193_p10), %s925_s18, 3  ;;  %vm278_vm1 = vcmask (!%p193_p10), 31744  }
  0x11   : > { %196 = sbr.rel (%p193_p10) target bundleno = 308 (0x134), region = 32  ;;  %p233_p12 = scmp.lt.s32.totalorder (!%p193_p10), %s929_s19, 1  ;;  %748 = vmatprep.subr.msk.mxu0 (!%p193_p10), %vm327_vm0, %v270_v0  ;;  %774 = vmatprep.subr.msk.mxu1 (!%p193_p10), %vm327_vm0, %v270_v0  ;;  %v1073_v17 = vld [vmem:[%s1217_s2] ss:$0 sm:$0xff] (!%p193_p10)  ;;  %vm492_vm2 = vcmask (!%p193_p10), 15360   ;;  %vm546_vm3 = vcmask (!%p193_p10), 8192  }
  0x12   : > { %s1038_s7 = scalar_select %p135_p11, %s921_s17, %s137_s5  }
  0x13   : > { %p235_p13 = scmp.lt.s32.totalorder (!%p193_p10), %s701_s10, 15  ;;  %749 = vmatpush3.msk.msra.mxu0 (!%p193_p10), %vm327_vm0, %v270_v0  ;;  %775 = vmatpush3.msk.msra.mxu1 (!%p193_p10), %vm327_vm0, %v270_v0  ;;  %s943_s6 = smov (!%p193_p10), [#allocation2]  }
  0x14   : > { %s851_s8 = sshll.u32 (!%p193_p10), %s943_s6, 4  ;;  %s852_s8 = int_to_ptr.vmem [resolvable:$false] %s851_s8 }
  0x15   : > { %s853_s9 = scalar_lea.vmem (!%p193_p10), %s852_s8, 32 }
  0x18   : > { %s234_s11 = scalar_select %p233_p12, %s929_s19, 1 }
  0x19   : > { %s1236_s10 = smov (!%p235_p13, %s701_s10), 15 }
  0x1a   : > { %s703_s12 = sshll.u32 %s234_s11, 5  ;;  %s702_s13 = sshll.u32 %s1236_s10, 1 }
  0x1b   : > { %s1046_s14 = sadd.s32 %s703_s12, %s702_s13  ;;  %s230_s11 = sand.u32 1, %s917_s16  }
  0x1c   : > { %s704_s23 = sshll.u32 %s1046_s14, 3  ;;  %s727_s12 = sshll.u32 %s929_s19, 1 }
  0x1d   : > { %s241_s30 = scalar_lea.vmem %s1215_s0, %s704_s23  ;;  %s1081_s10 = scalar_lea.vmem %s1218_s3, %s704_s23 }
  0x1e   : > { %v254_v1 = vld [vmem:[%s241_s30] sm:$0xff]  ;;  %v255_v2 = vld [vmem:[%s241_s30 + $0x8] sm:$0xff]  ;;  %v256_v3 = vld [vmem:[%s241_s30 + $0x10] sm:$0xff]  ;;  %s573_s13 = sadd.s32 %s925_s18, %s727_s12  ;;  %s231_s23 = scalar_lea.vmem [#allocation2], %s230_s11 }
  0x1f   : > { %750 = vmatprep.mubr.msk.f32.mxu0 %vm278_vm1, %v254_v1  ;;  %v262_v4 = vld [vmem:[%s241_s30 + $0x40] sm:$0xff]  ;;  %v257_v5 = vld [vmem:[%s241_s30 + $0x18] sm:$0xff]  ;;  %v263_v6 = vld [vmem:[%s241_s30 + $0x48] sm:$0xff]  ;;  %s728_s14 = sshll.u32 %s573_s13, 4  ;;  %s577_s24 = sshll.u32 %s231_s23, 4  ;;  %s1164_s24 = int_to_ptr.vmem [resolvable:$true] %s577_s24 }
  0x20   : > { %751 = vmatmul.mubr.msk.f32.vlgmr.msra.gmra.mrb[0].mxu0 %vm278_vm1, %v255_v2  ;;  %762 = vmatprep.mubr.msk.f32.mxu1 %vm278_vm1, %v262_v4  ;;  %v264_v7 = vld [vmem:[%s241_s30 + $0x50] sm:$0xff]  ;;  %v258_v8 = vld [vmem:[%s241_s30 + $0x20] sm:$0xff]  ;;  %v265_v9 = vld [vmem:[%s241_s30 + $0x58] sm:$0xff]  ;;  %s1162_s5 = scalar_lea.hbm %s1219_s4, %s728_s14  ;;  %s559_s19 = scalar_lea.sflag [#allocation3], %s230_s11 }
  0x21   : > { %753 = vmatprep.mubr.msk.f32.mxu0 %vm278_vm1, %v256_v3  ;;  %763 = vmatmul.mubr.msk.f32.vlgmr.msra.gmra.mrb[0].mxu1 %vm278_vm1, %v263_v6  ;;  %v266_v10 = vld [vmem:[%s241_s30 + $0x60] sm:$0xff]  ;;  %v259_v11 = vld [vmem:[%s241_s30 + $0x28] sm:$0xff]  ;;  %v260_v12 = vld [vmem:[%s241_s30 + $0x30] sm:$0xff]  ;;  %s847_s18 = scalar_lea.vmem %s1164_s24, 16  ;;  %p854_p4 = scmp.lt.s32.totalorder %s1164_s24, %s852_s8 }
  0x22   : > { %765 = vmatprep.mubr.msk.f32.mxu1 %vm278_vm1, %v264_v7  ;;  %v267_v13 = vld [vmem:[%s241_s30 + $0x68] sm:$0xff]  ;;  %v268_v14 = vld [vmem:[%s241_s30 + $0x70] sm:$0xff]  ;;  %v261_v15 = vld [vmem:[%s241_s30 + $0x38] sm:$0xff]  ;;  %p848_p0 = scmp.ne.s32.totalorder %s1164_s24, %s847_s18  ;;  %p855_p5 = scmp.lt.s32.totalorder %s853_s9, %s847_s18 }
  0x23   : > { %v269_v16 = vld [vmem:[%s241_s30 + $0x78] sm:$0xff] }
  0x24   : > { %754 = vmatmul.mubr.msk.f32.gmra.mrb[2].mxu0 %vm278_vm1, %v257_v5  ;;  %p849_p1 = pnand %p848_p0, %p1020_p3  ;;  %p856_p6 = por %p855_p5, %p854_p4 }
  0x25   : > { %756 = vmatprep.mubr.msk.f32.mxu0 %vm278_vm1, %v258_v8  ;;  %766 = vmatmul.mubr.msk.f32.gmra.mrb[2].mxu1 %vm278_vm1, %v265_v9 }
  0x26   : > { %768 = vmatprep.mubr.msk.f32.mxu1 %vm278_vm1, %v266_v10  ;;  %p850_p2 = pneg %p849_p1 }
  0x28   : > { %757 = vmatmul.mubr.msk.f32.gmra.mrb[4].mxu0 %vm278_vm1, %v259_v11  ;;  %p857_p7 = pnand %p856_p6, %p850_p2 }
  0x29   : > { %759 = vmatprep.mubr.msk.f32.mxu0 %vm278_vm1, %v260_v12  ;;  %769 = vmatmul.mubr.msk.f32.gmra.mrb[4].mxu1 %vm278_vm1, %v267_v13 }
  0x2a   : > { %771 = vmatprep.mubr.msk.f32.mxu1 %vm278_vm1, %v268_v14 }
  0x2c   : > { %760 = vmatmul.mubr.msk.f32.gmra.mrb[6].mxu0 %vm278_vm1, %v261_v15 }
  0x2d   : > { %772 = vmatmul.mubr.msk.f32.gmra.mrb[6].mxu1 %vm278_vm1, %v269_v16 }
  0xf3   : > { %v752_v18 = vpop.f32.mrb[0].mxu0 }
  0xf4   : > { %v403_v19 = vadd.f32 %v752_v18, %v1073_v17  ;;  %v397_v20 = vpop.f32.mrb[1].mxu0  ;;  %v764_v22 = vpop.f32.mrb[0].mxu1 }
  0xf5   : > { %v398_v21 = vadd.f32 %v1073_v17, %v397_v20  ;;  %v1085_v24 = vadd.f32 %v764_v22, %v1073_v17  ;;  %v437_v25 = vpop.f32.mrb[1].mxu1 }
  0xf6   : > { %v477_v23 = vmax.f32 %v403_v19, 0.0  ;;  %v1088_v28 = vadd.f32 %v1073_v17, %v437_v25 }
  0xf7   : > { %v476_v26 = vmax.f32 %v398_v21, 0.0  ;;  %v755_v27 = vpop.f32.mrb[2].mxu0  ;;  %v485_v32 = vmax.f32 %v1085_v24, 0.0 }
  0xf8   : > { %494 = vst.msk [vmem:[%s1081_s10 + $0x8] sm:$0xff] %vm492_vm2, %v477_v23  ;;  %v510_v29 = vsel %vm492_vm2, %v477_v23, 0.0  ;;  %v413_v30 = vadd.f32 %v755_v27, %v1073_v17  ;;  %v407_v31 = vpop.f32.mrb[3].mxu0  ;;  %v484_v35 = vmax.f32 %v1088_v28, 0.0  ;;  %v767_v36 = vpop.f32.mrb[2].mxu1 }
  0xf9   : > { %493 = vst.msk [vmem:[%s1081_s10] sm:$0xff] %vm492_vm2, %v476_v26  ;;  %v509_v33 = vsel %vm492_vm2, %v476_v26, 0.0  ;;  %v408_v34 = vadd.f32 %v1073_v17, %v407_v31  ;;  %502 = vst.msk [vmem:[%s1081_s10 + $0x48] sm:$0xff] %vm492_vm2, %v485_v32  ;;  %v453_v39 = vadd.f32 %v767_v36, %v1073_v17  ;;  %v447_v40 = vpop.f32.mrb[3].mxu1  ;;  %v526_v19 = vsel %vm492_vm2, %v485_v32, 0.0 }
  0xfa   : > { %v511_v37 = vadd.f32 %v510_v29, %v509_v33  ;;  %v479_v38 = vmax.f32 %v413_v30, 0.0  ;;  %501 = vst.msk [vmem:[%s1081_s10 + $0x40] sm:$0xff] %vm492_vm2, %v484_v35  ;;  %v448_v43 = vadd.f32 %v1073_v17, %v447_v40  ;;  %v524_v16 = vsel %vm492_vm2, %v484_v35, 0.0 }
  0xfb   : > { %v478_v41 = vmax.f32 %v408_v34, 0.0  ;;  %v758_v42 = vpop.f32.mrb[4].mxu0  ;;  %v487_v46 = vmax.f32 %v453_v39, 0.0 }
  0xfc   : > { %496 = vst.msk [vmem:[%s1081_s10 + $0x18] sm:$0xff] %vm492_vm2, %v479_v38  ;;  %v423_v44 = vadd.f32 %v758_v42, %v1073_v17  ;;  %v417_v45 = vpop.f32.mrb[5].mxu0  ;;  %v486_v49 = vmax.f32 %v448_v43, 0.0  ;;  %v770_v50 = vpop.f32.mrb[4].mxu1  ;;  %v514_v55 = vsel %vm492_vm2, %v479_v38, 0.0 }
  0xfd   : > { %495 = vst.msk [vmem:[%s1081_s10 + $0x10] sm:$0xff] %vm492_vm2, %v478_v41  ;;  %v512_v47 = vsel %vm492_vm2, %v478_v41, 0.0  ;;  %v418_v48 = vadd.f32 %v1073_v17, %v417_v45  ;;  %504 = vst.msk [vmem:[%s1081_s10 + $0x58] sm:$0xff] %vm492_vm2, %v487_v46  ;;  %v463_v53 = vadd.f32 %v770_v50, %v1073_v17  ;;  %v457_v54 = vpop.f32.mrb[5].mxu1  ;;  %v530_v23 = vsel %vm492_vm2, %v487_v46, 0.0 }
  0xfe   : > { %v513_v51 = vadd.f32 %v512_v47, %v511_v37  ;;  %v481_v52 = vmax.f32 %v423_v44, 0.0  ;;  %503 = vst.msk [vmem:[%s1081_s10 + $0x50] sm:$0xff] %vm492_vm2, %v486_v49  ;;  %v458_v58 = vadd.f32 %v1073_v17, %v457_v54  ;;  %v528_v20 = vsel %vm492_vm2, %v486_v49, 0.0 }
  0xff   : > { %v480_v56 = vmax.f32 %v418_v48, 0.0  ;;  %v761_v57 = vpop.f32.mrb[6].mxu0  ;;  %v489_v62 = vmax.f32 %v463_v53, 0.0 }
 0x100   : > { %498 = vst.msk [vmem:[%s1081_s10 + $0x28] sm:$0xff] %vm492_vm2, %v481_v52  ;;  %v515_v59 = vadd.f32 %v514_v55, %v513_v51  ;;  %v433_v60 = vadd.f32 %v761_v57, %v1073_v17  ;;  %v427_v61 = vpop.f32.mrb[7].mxu0  ;;  %v488_v1 = vmax.f32 %v458_v58, 0.0  ;;  %v773_v2 = vpop.f32.mrb[6].mxu1  ;;  %v518_v7 = vsel %vm492_vm2, %v481_v52, 0.0 }
 0x101   : > { %497 = vst.msk [vmem:[%s1081_s10 + $0x20] sm:$0xff] %vm492_vm2, %v480_v56  ;;  %v516_v63 = vsel %vm492_vm2, %v480_v56, 0.0  ;;  %v428_v0 = vadd.f32 %v1073_v17, %v427_v61  ;;  %506 = vst.msk [vmem:[%s1081_s10 + $0x68] sm:$0xff] %vm492_vm2, %v489_v62  ;;  %v473_v5 = vadd.f32 %v773_v2, %v1073_v17  ;;  %v467_v6 = vpop.f32.mrb[7].mxu1  ;;  %v534_v28 = vsel %vm492_vm2, %v489_v62, 0.0 }
 0x102   : > { %v517_v3 = vadd.f32 %v516_v63, %v515_v59  ;;  %v483_v4 = vmax.f32 %v433_v60, 0.0  ;;  %505 = vst.msk [vmem:[%s1081_s10 + $0x60] sm:$0xff] %vm492_vm2, %v488_v1  ;;  %v468_v9 = vadd.f32 %v1073_v17, %v467_v6  ;;  %v532_v25 = vsel %vm492_vm2, %v488_v1, 0.0 }
 0x103   : > { %v482_v8 = vmax.f32 %v428_v0, 0.0  ;;  %v491_v11 = vmax.f32 %v473_v5, 0.0 }
 0x104   : > { %500 = vst.msk [vmem:[%s1081_s10 + $0x38] sm:$0xff] %vm492_vm2, %v483_v4  ;;  %v519_v10 = vadd.f32 %v518_v7, %v517_v3  ;;  %v490_v13 = vmax.f32 %v468_v9, 0.0  ;;  %v522_v15 = vsel %vm492_vm2, %v483_v4, 0.0 }
 0x105   : > { %499 = vst.msk [vmem:[%s1081_s10 + $0x30] sm:$0xff] %vm492_vm2, %v482_v8  ;;  %v520_v12 = vsel %vm492_vm2, %v482_v8, 0.0  ;;  %508 = vst.msk [vmem:[%s1081_s10 + $0x78] sm:$0xff] %vm492_vm2, %v491_v11  ;;  %v538_v31 = vsel %vm492_vm2, %v491_v11, 0.0 }
 0x106   : > { %v521_v14 = vadd.f32 %v520_v12, %v519_v10  ;;  %507 = vst.msk [vmem:[%s1081_s10 + $0x70] sm:$0xff] %vm492_vm2, %v490_v13  ;;  %v536_v29 = vsel %vm492_vm2, %v490_v13, 0.0 }
 0x108   : > { %v523_v18 = vadd.f32 %v522_v15, %v521_v14 }
 0x10a   : > { %v525_v17 = vadd.f32 %v524_v16, %v523_v18 }
 0x10c   : > { %v527_v21 = vadd.f32 %v526_v19, %v525_v17 }
 0x10e   : > { %v529_v22 = vadd.f32 %v528_v20, %v527_v21 }
 0x110   : > { %v531_v26 = vadd.f32 %v530_v23, %v529_v22 }
 0x112   : > { %v533_v27 = vadd.f32 %v532_v25, %v531_v26 }
 0x114   : > { %v535_v24 = vadd.f32 %v534_v28, %v533_v27 }
 0x116   : > { %v537_v30 = vadd.f32 %v536_v29, %v535_v24 }
 0x118   : > { %v539_v32 = vadd.f32 %v538_v31, %v537_v30 }
 0x11a   : > { %v540_v33 = vrot.slane %v539_v32, 4 }
 0x11c   : > { %v541_v34 = vadd.f32 %v540_v33, %v539_v32 }
 0x11e   : > { %v542_v35 = vrot.slane %v541_v34, 2 }
 0x120   : > { %v543_v36 = vadd.f32 %v542_v35, %v541_v34 }
 0x122   : > { %v544_v37 = vrot.slane %v543_v36, 1 }
 0x124   : > { %v545_v38 = vadd.f32 %v544_v37, %v543_v36 }
 0x126   : > { %547 = vst.msk [vmem:[%s231_s23] sm:$0x1] %vm546_vm3, %v545_v38 }
 0x127   : > { %860 = shalt.err (!%p857_p7)
}
 0x128   : > { %s861_s10 = scalar_lea.hbm %s1162_s5, 16  ;;  %s865_s13 = scalar_lea.hbm %s1219_s4, 64 }
 0x129   : > { %p862_p9 = scmp.ne.s32.totalorder %s1162_s5, %s861_s10  ;;  %p866_p12 = scmp.lt.u32.totalorder %s1162_s5, %s1219_s4 }
 0x12a   : > { %p867_p13 = scmp.lt.u32.totalorder %s865_s13, %s861_s10  ;;  %p869_p1 = scmp.lt.u32.totalorder %s861_s10, %s1162_s5 }
 0x12b   : > { %p863_p10 = pnand %p862_p9, %p1020_p3 }
 0x12c   : > { %p868_p0 = por %p867_p13, %p866_p12 }
 0x12d   : > { %p864_p11 = pneg %p863_p10 }
 0x12e   : > { %p870_p2 = por %p869_p1, %p868_p0 }
 0x130   : > { %p871_p4 = pnand %p870_p2, %p864_p11 }
 0x132   : > { %874 = shalt.err (!%p871_p4)
}
 0x133   : > { %776 = dma.vmem_to_hbm [thread:$0]  (%p1020_p3), %s1164_s24, 16, %s1162_s5, %s559_s19  }
 0x134 PF: > { %p782_p5 = scmp.ge.s32.totalorder %s941_s22, 2  ;;  %s602_s27 = sand.u32 1, %s913_s15  }
 0x135   : > { %s603_s30 = scalar_lea.sflag [#allocation3], %s602_s27 }
 0x136   : > { %p779_p6 = pnand %p782_p5, %p1029_p8 }
 0x138   : > { %908 = dma.done.wait (!%p779_p6), %s603_s30, 16  }
 0x139   : > { %910 = vsyncadd (!%p779_p6), %s603_s30, 4294967280  ;;  %s18_s22 = sadd.s32 1, %s941_s22   ;;  %s1222_s15 = smov %s917_s16 }
 0x13a   : > { %p15_p7 = scmp.ge.s32.totalorder %s18_s22, 6   ;;  %s1223_s16 = smov %s921_s17 }
 0x13b   : > { %s1224_s17 = smov %s1038_s7  ;;  %s1225_s18 = smov %s933_s20 }
 0x13c   : > { %s1226_s19 = smov %s937_s21  ;;  %s1227_s20 = smov %s1230_s25 }
 0x13d   : > { %s1228_s21 = smov %s1234_s26  ;;  %17 = sbr.rel (!%p15_p7) target bundleno = 5 (0x5), region = 79 }
 0x144   :  { %607 = vsyncpa [#allocation3], 1 }
 0x145   :  { %609 = vsyncpa [#allocation3 + $0x1], 1 }

</bundles_post_ra>
